<compile_context>
chip_gen: v5e
topology: v5e:2x2
jax: 0.10.0
libtpu: 0.0.40
codegen_flags: <defaults>
</compile_context>

<pallas_src>
import jax
import jax.numpy as jnp
from jax.experimental import pallas as pl
from jax.experimental.pallas import tpu as pltpu

ALPHA = 0.0  # module-level `alpha` in the reference code (trace-time constant)


def vae_encoder_kernel(x_ref, eps_ref, w1_ref, w2_ref, wh_ref, bias_ref, out_ref):
    """Fused encoder for both images.

    x_ref    : (2B, D)   bf16   rows [0:B] = d1, rows [B:2B] = d2
    eps_ref  : (B, L) f32 if ALPHA == 0 else (2B, L) f32
    w1_ref   : (D, H1)   bf16
    w2_ref   : (H1, H2)  bf16
    wh_ref   : (H2, 2L)  bf16   [wmu | wlogvar] fused head
    bias_ref : (3, Wb)   f32    row0=b1, row1=b2, row2=[bmu|blogvar] (lane-padded)
    out_ref  : (B, Wo)   f32    [z_interp | mu_avg | logvar_avg | pad]
    """
    two_b = x_ref.shape[0]
    b = two_b // 2
    h1 = w1_ref.shape[1]
    h2 = w2_ref.shape[1]
    two_l = wh_ref.shape[1]
    l = two_l // 2

    bias = bias_ref[...]
    b1 = bias[0:1, :h1]
    b2 = bias[1:2, :h2]
    bh = bias[2:3, :two_l]

    # Shared Linear->ReLU->Linear->ReLU->fused-head chain over both images.
    # bf16 only at the MXU boundary; accumulation and elementwise math in f32.
    h = jnp.dot(x_ref[...], w1_ref[...], preferred_element_type=jnp.float32) + b1
    h = jnp.maximum(h, 0.0).astype(jnp.bfloat16)
    h = jnp.dot(h, w2_ref[...], preferred_element_type=jnp.float32) + b2
    h = jnp.maximum(h, 0.0).astype(jnp.bfloat16)
    mulv = jnp.dot(h, wh_ref[...], preferred_element_type=jnp.float32) + bh  # (2B, 2L)

    mulv_a = mulv[:b]          # [mu_a | logvar_a]
    mulv_b = mulv[b:]          # [mu_b | logvar_b]
    mu_a = mulv_a[:, :l]
    lv_a = mulv_a[:, l:]

    # reparameterize + interpolation (ALPHA is a trace-time Python constant).
    if ALPHA == 0.0:
        # z == z_a exactly; z_b branch (exp/mul/add and the eps_b DMA) is elided.
        z = mu_a + eps_ref[...] * jnp.exp(0.5 * lv_a)
    else:
        eps = eps_ref[...]
        mu_b_ = mulv_b[:, :l]
        lv_b_ = mulv_b[:, l:]
        z_a = mu_a + eps[:b] * jnp.exp(0.5 * lv_a)
        z_b = mu_b_ + eps[b:] * jnp.exp(0.5 * lv_b_)
        z = z_a + ALPHA * (z_b - z_a)

    mulv_avg = 0.5 * (mulv_a + mulv_b)          # [mu_avg | logvar_avg], (B, 2L)

    pieces = [z, mulv_avg]
    pad_w = out_ref.shape[1] - 3 * l
    if pad_w > 0:
        pieces.append(jnp.zeros((b, pad_w), jnp.float32))
    # Single lane-dense store: [z | mu_avg | logvar_avg | pad].
    out_ref[...] = jnp.concatenate(pieces, axis=1)


def _round_up(n, m):
    return ((n + m - 1) // m) * m


def vae_encoder_forward(d1, d2, eps_a, eps_b, params):
    """params = (w1, b1, w2, b2, wmu, bmu, wlv, blv); weights stored as (in, out)."""
    w1, b1, w2, b2, wmu, bmu, wlv, blv = params
    batch, data = d1.shape
    h1 = w1.shape[1]
    h2 = w2.shape[1]
    latent = wmu.shape[1]

    # Stack the two branches so the Linear chain runs once over 2*batch rows.
    x = jnp.concatenate([d1, d2], axis=0).astype(jnp.bfloat16)
    # Fuse mu / logvar heads into one weight / bias.
    wh = jnp.concatenate([wmu, wlv], axis=1)
    bh = jnp.concatenate([bmu, blv], axis=1)
    # eps_b is only needed when ALPHA != 0 (z reduces to z_a otherwise).
    eps = eps_a if ALPHA == 0.0 else jnp.concatenate([eps_a, eps_b], axis=0)

    # Pack the three small biases into one lane-padded f32 buffer (one DMA).
    bias_w = _round_up(max(h1, h2, 2 * latent), 128)

    def _pad_row(v):
        return jnp.pad(v, ((0, 0), (0, bias_w - v.shape[1])))

    bias = jnp.concatenate([_pad_row(b1), _pad_row(b2), _pad_row(bh)], axis=0)

    # bf16 matmul operands: native MXU rate, half the weight DMA bytes.
    w1b = w1.astype(jnp.bfloat16)
    w2b = w2.astype(jnp.bfloat16)
    whb = wh.astype(jnp.bfloat16)

    out_w = _round_up(3 * latent, 128)
    out_shape = jax.ShapeDtypeStruct((batch, out_w), jnp.float32)

    cost = pl.CostEstimate(
        flops=2 * (2 * batch) * (data * h1 + h1 * h2 + h2 * 2 * latent),
        transcendentals=(batch if ALPHA == 0.0 else 2 * batch) * latent,
        bytes_accessed=(x.size * 2 + eps.size * 4 + w1b.size * 2 + w2b.size * 2
                        + whb.size * 2 + bias.size * 4 + batch * out_w * 4),
    )

    vmem = pl.BlockSpec(memory_space=pltpu.MemorySpace.VMEM)
    # Everything fits comfortably in VMEM (<1 MiB), so the kernel is gridless.
    # TODO(synk): at real flattened-PNG sizes / large batch, add a batch grid with
    # dimension_semantics=("parallel",) so v7x's two TensorCores split the rows.
    out = pl.pallas_call(
        vae_encoder_kernel,
        out_shape=out_shape,
        in_specs=[vmem] * 6,
        out_specs=vmem,
        cost_estimate=cost,
    )(x, eps, w1b, w2b, whb, bias)

    z_interp = out[:, :latent]
    mu_avg = out[:, latent:2 * latent]
    lv_avg = out[:, 2 * latent:3 * latent]
    return z_interp, mu_avg, lv_avg


def init_params(key, data_size, hidden_sizes, latent_size):
    """Deterministic PyTorch-style (uniform +-1/sqrt(fan_in)) init."""
    sizes = [data_size] + list(hidden_sizes)
    params = []
    keys = jax.random.split(key, (len(sizes) - 1) + 2)
    k_idx = 0
    # encoder hidden layers
    for in_sz, out_sz in zip(sizes[:-1], sizes[1:]):
        kw, kb = jax.random.split(keys[k_idx])
        k_idx += 1
        bound = 1.0 / jnp.sqrt(in_sz)
        w = jax.random.uniform(kw, (in_sz, out_sz), jnp.float32, -bound, bound)
        b = jax.random.uniform(kb, (1, out_sz), jnp.float32, -bound, bound)
        params += [w, b]
    # mu / logvar heads
    last = sizes[-1]
    for _ in range(2):
        kw, kb = jax.random.split(keys[k_idx])
        k_idx += 1
        bound = 1.0 / jnp.sqrt(last)
        w = jax.random.uniform(kw, (last, latent_size), jnp.float32, -bound, bound)
        b = jax.random.uniform(kb, (1, latent_size), jnp.float32, -bound, bound)
        params += [w, b]
    return tuple(params)


if __name__ == "__main__":
    # Small shapes consistent with the module: flattened image rows as input.
    batch = 8
    data_size = 128
    hidden_sizes = [128, 64]
    latent_size = 32

    key = jax.random.PRNGKey(0)
    k_p, k_d1, k_d2, k_e1, k_e2 = jax.random.split(key, 5)

    params = init_params(k_p, data_size, hidden_sizes, latent_size)

    # Synthetic stand-ins for the two flattened PNGs (values in [0, 1] like ToTensor).
    d1 = jax.random.uniform(k_d1, (batch, data_size), jnp.float32)
    d2 = jax.random.uniform(k_d2, (batch, data_size), jnp.float32)
    # Pre-sampled standard-normal noise for reparameterize (torch.randn_like).
    eps_a = jax.random.normal(k_e1, (batch, latent_size), jnp.float32)
    eps_b = jax.random.normal(k_e2, (batch, latent_size), jnp.float32)

    z_interp, mu_avg, lv_avg = vae_encoder_forward(d1, d2, eps_a, eps_b, params)
    jax.block_until_ready((z_interp, mu_avg, lv_avg))

    # ---------------- references ----------------
    w1, b1, w2, b2, wmu, bmu, wlv, blv = params

    def ref_encode(x, cast):
        def mm(a, w):
            if cast:  # same precision as the kernel (bf16 MXU operands, f32 accum)
                a = a.astype(jnp.bfloat16)
                w = w.astype(jnp.bfloat16)
            return jnp.dot(a, w, preferred_element_type=jnp.float32)

        h = jnp.maximum(mm(x, w1) + b1, 0.0)
        h = jnp.maximum(mm(h, w2) + b2, 0.0)
        return mm(h, wmu) + bmu, mm(h, wlv) + blv

    def ref_forward(cast):
        mu_a, lv_a = ref_encode(d1, cast)
        mu_b, lv_b = ref_encode(d2, cast)
        z_a = mu_a + eps_a * jnp.exp(0.5 * lv_a)
        z_b = mu_b + eps_b * jnp.exp(0.5 * lv_b)
        zi = z_a + ALPHA * (z_b - z_a)
        return zi, 0.5 * (mu_a + mu_b), 0.5 * (lv_a + lv_b)

    # 1) Tight check against a precision-matched (bf16 matmul, f32 elementwise) reference.
    z_bf, mu_bf, lv_bf = ref_forward(cast=True)
    assert jnp.allclose(z_interp, z_bf, atol=1e-4, rtol=1e-4)
    assert jnp.allclose(mu_avg, mu_bf, atol=1e-4, rtol=1e-4)
    assert jnp.allclose(lv_avg, lv_bf, atol=1e-4, rtol=1e-4)

    # 2) Loose sanity check against the full-f32 PyTorch-semantics reference
    #    (difference is only bf16 quantization of the matmul operands).
    z_f32, mu_f32, lv_f32 = ref_forward(cast=False)
    for got, ref in ((z_interp, z_f32), (mu_avg, mu_f32), (lv_avg, lv_f32)):
        assert float(jnp.max(jnp.abs(got - ref))) < 1e-1

    print("KERNEL_OK")
</pallas_src>

<mosaic_0001>
module attributes {stable_mosaic.version = 11 : i64} {
  func.func @vae_encoder_kernel(%arg0: memref<16x128xbf16, #tpu.memory_space<vmem>>, %arg1: memref<8x32xf32, #tpu.memory_space<vmem>>, %arg2: memref<128x128xbf16, #tpu.memory_space<vmem>>, %arg3: memref<128x64xbf16, #tpu.memory_space<vmem>>, %arg4: memref<64x64xbf16, #tpu.memory_space<vmem>>, %arg5: memref<3x128xf32, #tpu.memory_space<vmem>>, %arg6: memref<8x128xf32, #tpu.memory_space<vmem>>) attributes {dimension_semantics = [], scalar_prefetch = 0 : i64, scratch_operands = 0 : i64, tpu.core_type = #tpu.core_type<tc>} {
    %c0 = arith.constant 0 : index
    %c0_0 = arith.constant 0 : index
    %0 = vector.load %arg5[%c0, %c0_0] : memref<3x128xf32, #tpu.memory_space<vmem>>, vector<3x128xf32>
    %1 = vector.extract_strided_slice %0 {offsets = [0, 0], sizes = [1, 128], strides = [1, 1]} : vector<3x128xf32> to vector<1x128xf32>
    %2 = vector.extract_strided_slice %0 {offsets = [1, 0], sizes = [1, 64], strides = [1, 1]} : vector<3x128xf32> to vector<1x64xf32>
    %3 = vector.extract_strided_slice %0 {offsets = [2, 0], sizes = [1, 64], strides = [1, 1]} : vector<3x128xf32> to vector<1x64xf32>
    %c0_1 = arith.constant 0 : index
    %c0_2 = arith.constant 0 : index
    %4 = vector.load %arg0[%c0_1, %c0_2] : memref<16x128xbf16, #tpu.memory_space<vmem>>, vector<16x128xbf16>
    %c0_3 = arith.constant 0 : index
    %c0_4 = arith.constant 0 : index
    %5 = vector.load %arg2[%c0_3, %c0_4] : memref<128x128xbf16, #tpu.memory_space<vmem>>, vector<128x128xbf16>
    %cst = arith.constant dense<0.000000e+00> : vector<16x128xf32>
    %6 = tpu.matmul %4, %5, %cst {dimension_numbers = #tpu.dot_dimension_numbers<[1], [0], [0], [1], [0, 0, 1, 1], [], []>} : vector<16x128xbf16>, vector<128x128xbf16>, vector<16x128xf32> -> vector<16x128xf32>
    %7 = vector.broadcast %1 : vector<1x128xf32> to vector<16x128xf32>
    %8 = arith.addf %6, %7 : vector<16x128xf32>
    %cst_5 = arith.constant 0.000000e+00 : f32
    %9 = vector.broadcast %cst_5 : f32 to vector<16x128xf32>
    %10 = arith.maximumf %8, %9 : vector<16x128xf32>
    %11 = arith.truncf %10 : vector<16x128xf32> to vector<16x128xbf16>
    %c0_6 = arith.constant 0 : index
    %c0_7 = arith.constant 0 : index
    %12 = vector.load %arg3[%c0_6, %c0_7] : memref<128x64xbf16, #tpu.memory_space<vmem>>, vector<128x64xbf16>
    %cst_8 = arith.constant dense<0.000000e+00> : vector<16x64xf32>
    %13 = tpu.matmul %11, %12, %cst_8 {dimension_numbers = #tpu.dot_dimension_numbers<[1], [0], [0], [1], [0, 0, 1, 1], [], []>} : vector<16x128xbf16>, vector<128x64xbf16>, vector<16x64xf32> -> vector<16x64xf32>
    %14 = vector.broadcast %2 : vector<1x64xf32> to vector<16x64xf32>
    %15 = arith.addf %13, %14 : vector<16x64xf32>
    %cst_9 = arith.constant 0.000000e+00 : f32
    %16 = vector.broadcast %cst_9 : f32 to vector<16x64xf32>
    %17 = arith.maximumf %15, %16 : vector<16x64xf32>
    %18 = arith.truncf %17 : vector<16x64xf32> to vector<16x64xbf16>
    %c0_10 = arith.constant 0 : index
    %c0_11 = arith.constant 0 : index
    %19 = vector.load %arg4[%c0_10, %c0_11] : memref<64x64xbf16, #tpu.memory_space<vmem>>, vector<64x64xbf16>
    %cst_12 = arith.constant dense<0.000000e+00> : vector<16x64xf32>
    %20 = tpu.matmul %18, %19, %cst_12 {dimension_numbers = #tpu.dot_dimension_numbers<[1], [0], [0], [1], [0, 0, 1, 1], [], []>} : vector<16x64xbf16>, vector<64x64xbf16>, vector<16x64xf32> -> vector<16x64xf32>
    %21 = vector.broadcast %3 : vector<1x64xf32> to vector<16x64xf32>
    %22 = arith.addf %20, %21 : vector<16x64xf32>
    %23 = vector.extract_strided_slice %22 {offsets = [0, 0], sizes = [8, 64], strides = [1, 1]} : vector<16x64xf32> to vector<8x64xf32>
    %24 = vector.extract_strided_slice %22 {offsets = [8, 0], sizes = [8, 64], strides = [1, 1]} : vector<16x64xf32> to vector<8x64xf32>
    %25 = vector.extract_strided_slice %23 {offsets = [0, 0], sizes = [8, 32], strides = [1, 1]} : vector<8x64xf32> to vector<8x32xf32>
    %26 = vector.extract_strided_slice %23 {offsets = [0, 32], sizes = [8, 32], strides = [1, 1]} : vector<8x64xf32> to vector<8x32xf32>
    %c0_13 = arith.constant 0 : index
    %c0_14 = arith.constant 0 : index
    %27 = vector.load %arg1[%c0_13, %c0_14] : memref<8x32xf32, #tpu.memory_space<vmem>>, vector<8x32xf32>
    %cst_15 = arith.constant 5.000000e-01 : f32
    %28 = vector.broadcast %cst_15 : f32 to vector<8x32xf32>
    %29 = arith.mulf %28, %26 : vector<8x32xf32>
    %30 = math.exp %29 : vector<8x32xf32>
    %31 = arith.mulf %27, %30 : vector<8x32xf32>
    %32 = arith.addf %25, %31 : vector<8x32xf32>
    %33 = arith.addf %23, %24 : vector<8x64xf32>
    %cst_16 = arith.constant 5.000000e-01 : f32
    %34 = vector.broadcast %cst_16 : f32 to vector<8x64xf32>
    %35 = arith.mulf %34, %33 : vector<8x64xf32>
    %cst_17 = arith.constant 0.000000e+00 : f32
    %36 = vector.broadcast %cst_17 : f32 to vector<8x32xf32>
    %37 = tpu.concatenate %32, %35, %36 in 1 : vector<8x32xf32>, vector<8x64xf32>, vector<8x32xf32> -> vector<8x128xf32>
    %c0_18 = arith.constant 0 : index
    %c0_19 = arith.constant 0 : index
    %38 = vector.load %arg6[%c0_18, %c0_19] : memref<8x128xf32, #tpu.memory_space<vmem>>, vector<8x128xf32>
    tpu.vector_store %arg6[%c0_18, %c0_19], %37 {strides = array<i32>} : memref<8x128xf32, #tpu.memory_space<vmem>>, vector<8x128xf32>,
    return
  }
}

</mosaic_0001>

<bundles_post_ra>
// kernel: tpu_custom_call.1
= control target key start
LH: loop header
LB: loop body
LE: loop exit
PB: predicated region body
PF: predicated region fallthrough
CT: control target
= control target key end

     0   :  { %11 = vsyncpa [#allocation3], 0  ;;  %s664_s0 = inlined_call_operand.hbm [shape: bf16[16,128], index: 0, kind: input, shape index: {}]   ;;  %s665_s1 = inlined_call_operand.hbm [shape: f32[8,32], index: 1, kind: input, shape index: {}]   ;;  %s666_s2 = inlined_call_operand.vmem [shape: bf16[128,128], index: 2, kind: input, shape index: {}]   ;;  %s667_s3 = inlined_call_operand.vmem [shape: bf16[128,64], index: 3, kind: input, shape index: {}]   ;;  %s668_s4 = inlined_call_operand.vmem [shape: bf16[64,64], index: 4, kind: input, shape index: {}]   ;;  %s669_s5 = inlined_call_operand.hbm [shape: f32[3,128], index: 5, kind: input, shape index: {}]   ;;  %s670_s6 = inlined_call_operand.hbm [shape: f32[8,128], index: 6, kind: output, shape index: {}]  }
   0x1   :  { %12 = vsyncpa [#allocation6], 0  ;;  %s32_s23 = sshll.u32 %s665_s1, 4  ;;  %s33_s23 = int_to_ptr.hbm [resolvable:$true] %s32_s23 }
   0x2   :  { %13 = vsyncpa [#allocation4], 0  ;;  %s549_s24 = smov [#allocation5]   ;;  %s18_s28 = sshll.u32 %s664_s0, 4  ;;  %s19_s28 = int_to_ptr.hbm [resolvable:$true] %s18_s28 }
   0x3   :  { %s34_s25 = sshll.u32 %s549_s24, 4  ;;  %s550_s29 = smov [#allocation2]   ;;  %s35_s25 = int_to_ptr.vmem [resolvable:$true] %s34_s25 }
   0x4   :  { %37 = dma.hbm_to_vmem [thread:$0]  %s33_s23, 128, %s35_s25, [#allocation6]  }
   0x5   :  { %s20_s30 = sshll.u32 %s550_s29, 4  ;;  %s551_s7 = smov 64   ;;  %s21_s30 = int_to_ptr.vmem [resolvable:$true] %s20_s30 }
   0x6   :  { %s552_s8 = smov 4   ;;  %s49_s1 = sshll.u32 %s669_s5, 4  ;;  %s50_s1 = int_to_ptr.hbm [resolvable:$true] %s49_s1 }
   0x7   :  { %26 = dma.hbm_to_vmem [thread:$0]  %s19_s28, 128, %s21_s30, [#allocation3], %s551_s7, %s551_s7, %s552_s8  }
   0x8   :  { %s553_s11 = smov [#allocation7]  }
   0x9   :  { %s51_s12 = sshll.u32 %s553_s11, 4  ;;  %s52_s12 = int_to_ptr.vmem [resolvable:$true] %s51_s12 }
   0xa   :  { %54 = dma.hbm_to_vmem [thread:$0]  %s50_s1, 64, %s52_s12, [#allocation6]  }
   0xb   :  { %543 = dma.done.wait [#allocation3], 128  }
   0xc   :  { %544 = vsyncadd [#allocation3], 4294967168 }
   0xd   :  { %545 = dma.done.wait [#allocation6], 192  }
   0xe   :  { %546 = vsyncadd [#allocation6], 4294967104  ;;  %v424_v0 = vld [vmem:[%s666_s2 + $0x38] sm:$0xff]  ;;  %v423_v1 = vld [vmem:[%s666_s2 + $0x30] sm:$0xff]  ;;  %vm274_vm0 = vcmask 523264   ;;  %s555_s22 = smov 32  }
   0xf   :  { %142 = vmatpush.bf16.msra.mxu0 %v424_v0  ;;  %v432_v2 = vld [vmem:[%s667_s3 + $0x38] sm:$0xff]  ;;  %v431_v3 = vld [vmem:[%s667_s3 + $0x30] sm:$0xff]  ;;  %v422_v4 = vld [vmem:[%s666_s2 + $0x28] sm:$0xff]  ;;  %vm308_vm1 = vcmask 261120   ;;  %s556_s23 = smov [#allocation8]   ;;  %s320_s27 = sshll.u32 %s670_s6, 4  ;;  %s321_s27 = int_to_ptr.hbm [resolvable:$true] %s320_s27 }
  0x10   :  { %224 = vmatpush.bf16.msra.mxu1 %v432_v2  ;;  %v430_v5 = vld [vmem:[%s667_s3 + $0x28] sm:$0xff]  ;;  %v421_v6 = vld [vmem:[%s666_s2 + $0x20] sm:$0xff]  ;;  %v420_v8 = vld [vmem:[%s666_s2 + $0x18] sm:$0xff]  ;;  %s318_s24 = sshll.u32 %s556_s23, 4  ;;  %vm310_vm2 = vcmask 785408   ;;  %s319_s24 = int_to_ptr.vmem [resolvable:$true] %s318_s24 }
  0x11   :  { %v429_v7 = vld [vmem:[%s667_s3 + $0x20] sm:$0xff]  ;;  %v419_v9 = vld [vmem:[%s666_s2 + $0x10] sm:$0xff]  ;;  %v418_v10 = vld [vmem:[%s666_s2 + $0x8] sm:$0xff] }
  0x12   :  { %v417_v11 = vld [vmem:[%s666_s2] sm:$0xff]  ;;  %v428_v13 = vld [vmem:[%s667_s3 + $0x18] sm:$0xff]  ;;  %v427_v14 = vld [vmem:[%s667_s3 + $0x10] sm:$0xff] }
  0x13   :  { %143 = vmatpush.bf16.msra.mxu0 %v423_v1  ;;  %v416_v12 = vld [vmem:[#allocation2] sm:$0xff]  ;;  %v426_v15 = vld [vmem:[%s667_s3 + $0x8] sm:$0xff]  ;;  %v68_v17 = vld [vmem:[#allocation7] sm:$0x7] }
  0x14   :  { %225 = vmatpush.bf16.msra.mxu1 %v431_v3  ;;  %v425_v16 = vld [vmem:[%s667_s3] sm:$0xff]  ;;  %v87_v19 = vperm.slane %v68_v17, 0  ;;  %v436_v26 = vld [vmem:[%s668_s4 + $0x18] sm:$0xff]  ;;  %v435_v27 = vld [vmem:[%s668_s4 + $0x10] sm:$0xff]  ;;  %v175_v31 = vperm.slane %v68_v17, 1  ;;  %v249_v38 = vperm.slane %v68_v17, 2 }
  0x15   :  { %282 = vmatpush.bf16.msra.mxu2 %v436_v26  ;;  %v434_v28 = vld [vmem:[%s668_s4 + $0x8] sm:$0xff]  ;;  %v433_v29 = vld [vmem:[%s668_s4] sm:$0xff]  ;;  %s554_s4 = smov 96  }
  0x16   :  { %v292_v48 = vld [vmem:[#allocation5] sm:$0xff] }
  0x17   :  { %144 = vmatpush.bf16.msra.mxu0 %v422_v4 }
  0x18   :  { %226 = vmatpush.bf16.msra.mxu1 %v430_v5 }
  0x19   :  { %283 = vmatpush.bf16.msra.mxu2 %v435_v27 }
  0x1b   :  { %145 = vmatpush.bf16.msra.mxu0 %v421_v6 }
  0x1c   :  { %227 = vmatpush.bf16.msra.mxu1 %v429_v7 }
  0x1d   :  { %284 = vmatpush.bf16.msra.mxu2 %v434_v28 }
  0x1f   :  { %146 = vmatpush.bf16.msra.mxu0 %v420_v8 }
  0x20   :  { %228 = vmatpush.bf16.msra.mxu1 %v428_v13 }
  0x21   :  { %285 = vmatpush.bf16.msra.mxu2 %v433_v29 }
  0x23   :  { %147 = vmatpush.bf16.msra.mxu0 %v419_v9 }
  0x24   :  { %229 = vmatpush.bf16.msra.mxu1 %v427_v14 }
  0x27   :  { %148 = vmatpush.bf16.msra.mxu0 %v418_v10 }
  0x28   :  { %230 = vmatpush.bf16.msra.mxu1 %v426_v15 }
  0x2b   :  { %149 = vmatpush.bf16.msra.mxu0 %v417_v11 }
  0x2c   :  { %231 = vmatpush.bf16.msra.mxu1 %v425_v16 }
  0x2e   :  { %150 = vmatmul.bf16.vlgmr.msra.gmra.mxu0 %v416_v12 }
  0xab   :  { %v151_v18 = vpop.f32.mrf.mxu0 }
  0xac   :  { %v152_v20 = vadd.f32 %v151_v18, %v87_v19 }
  0xae   :  { %v156_v23 = vmax.f32 %v152_v20, 0.0 }
  0xb3   :  { %v153_v21 = vpop.f32.mrf.mxu0 }
  0xb4   :  { %v154_v22 = vadd.f32 %v153_v21, %v87_v19 }
  0xb6   :  { %v157_v24 = vmax.f32 %v154_v22, 0.0 }
  0xb8   :  { %v158_v25 = vpack.c.bf16 %v157_v24, %v156_v23 }
  0xba   :  { %232 = vmatmul.bf16.vlgmr.msra.gmra.mxu1 %v158_v25 }
 0x137   :  { %v233_v30 = vpop.f32.mrf.mxu1 }
 0x138   :  { %v234_v32 = vadd.f32 %v233_v30, %v175_v31 }
 0x13a   :  { %v238_v35 = vmax.f32 %v234_v32, 0.0 }
 0x13f   :  { %v235_v33 = vpop.f32.mrf.mxu1 }
 0x140   :  { %v236_v34 = vadd.f32 %v235_v33, %v175_v31 }
 0x142   :  { %v239_v36 = vmax.f32 %v236_v34, 0.0 }
 0x144   :  { %v240_v37 = vpack.c.bf16 %v239_v36, %v238_v35 }
 0x146   :  { %415 = vmatmul.msk.bf16.vlgmr.msra.gmra.mxu2 %vm274_vm0, %v240_v37 }
 0x1c9   :  { %v287_v39 = vpop.f32.mrf.mxu2 }
 0x1ca   :  { %v288_v40 = vadd.f32 %v287_v39, %v249_v38 }
 0x1cc   :  { %v293_v41 = vmul.f32 0.5, %v288_v40 }
 0x1ce   :  { %v294_v42 = vmul.f32 1.442695, %v293_v41 }
 0x1d0   :  { %445 = vpow2.f32 %v294_v42 }
 0x1d1   :  { %v289_v43 = vpop.f32.mrf.mxu2 }
 0x1d2   :  { %v290_v44 = vadd.f32 %v289_v43, %v249_v38 }
 0x1d4   :  { %v302_v46 = vadd.f32 %v290_v44, %v288_v40 }
 0x1d6   :  { %v446_v45 = vpop.eup %445  ;;  %v303_v47 = vmul.f32 0.5, %v302_v46 }
 0x1d7   :  { %297 = vrot.lane.b32.xlu0 %v446_v45, %s554_s4 }
 0x1df   :  { %305 = vrot.lane.b32.xlu0 %v303_v47, %s555_s22 }
 0x249   :  { %v298_v49 = vpop.permute.xlu0 %297 }
 0x24a   :  { %v300_v50 = vmul.f32 %v298_v49, %v292_v48 }
 0x24c   :  { %v301_v51 = vadd.f32 %v300_v50, %v288_v40 }
 0x251   :  { %v306_v52 = vpop.permute.xlu0 %305 }
 0x252   :  { %v309_v53 = vsel %vm308_vm1, %v301_v51, %v306_v52 }
 0x253   :  { %v311_v54 = vsel %vm310_vm2, %v309_v53, 0.0 }
 0x254   :  { %312 = vst [vmem:[#allocation8] sm:$0xff] %v311_v54 }
 0x255   :  { %323 = dma.vmem_to_hbm [thread:$0]  %s319_s24, 128, %s321_s27, [#allocation4]  }
 0x256   :  { %547 = dma.done.wait [#allocation4], 128  }
 0x257   :  { %548 = vsyncadd [#allocation4], 4294967168 }
 0x258   :  { %328 = vsyncpa [#allocation3], 1 }
 0x259   :  { %329 = vsyncpa [#allocation6], 1 }
 0x25a   :  { %330 = vsyncpa [#allocation4], 1 }

</bundles_post_ra>
